<compile_context>
chip_gen: v5e
topology: v5e:2x2
jax: 0.10.0
libtpu: 0.0.40
codegen_flags: <defaults>
</compile_context>

<pallas_src>
import functools

import jax
import jax.numpy as jnp
import numpy as np
from jax.experimental import pallas as pl
from jax.experimental.pallas import tpu as pltpu


# --------------------- Phase 1: global average pool (sum over HW) ---------------------

def _gap_kernel(x_ref, o_ref):
    # x_ref: (1, C, T)  one batch element, one HW tile (HW on the lane axis)
    # o_ref: (1, C, 1)  f32 running sum, accumulated across HW tiles
    @pl.when(pl.program_id(1) == 0)
    def _():
        o_ref[...] = jnp.zeros_like(o_ref)

    x = x_ref[0]                                                      # (C, T)
    part = jnp.sum(x.astype(jnp.float32), axis=-1, keepdims=True)     # (C, 1) f32
    o_ref[...] += part[None]


# --------------- Phase 2: gated 1x1 out-conv (gate folded into the weight) ------------

def _gated_conv_kernel(w_ref, b_ref, x_ref, o_ref):
    # w_ref: (1, C, C)  per-batch gated out-conv weight  (w_out * gate_b), x dtype
    # b_ref: (C, 1)     out-conv bias (f32)
    # x_ref: (1, C, T)  input tile
    # o_ref: (1, C, T)  lane-dense output tile
    x = x_ref[0]                                                      # (C, T)
    out = jnp.dot(w_ref[0], x, preferred_element_type=jnp.float32)    # (C, T) MXU
    out = out + b_ref[...]
    o_ref[0] = out.astype(o_ref.dtype)


# ----------------------------------- wrapper -------------------------------------------

def _pick_hw_tile(hw: int, target: int = 1024) -> int:
    """Largest multiple-of-128 divisor of hw that is <= target (else full hw)."""
    if hw <= target:
        return hw
    t = (target // 128) * 128
    while t >= 128:
        if hw % t == 0:
            return t
        t -= 128
    return hw  # block == full extent is always legal


@functools.partial(jax.jit, static_argnames=("hw_tile",))
def distiller_pallas(x_nchw, w_fc, b_fc, w_out, b_out, *, hw_tile=None):
    """x_nchw: (B, C, H, W). Returns (B, C, H, W). NCHW-native, no transposes."""
    B, C, H, W = x_nchw.shape
    HW = H * W
    x = x_nchw.reshape(B, C, HW)            # contiguous collapse — free, no data movement

    T = hw_tile if hw_tile is not None else _pick_hw_tile(HW)
    n_t = HW // T

    cparams_red = pltpu.CompilerParams(
        dimension_semantics=("parallel", "arbitrary"),
        vmem_limit_bytes=32 * 1024 * 1024,
    )
    cparams_par = pltpu.CompilerParams(
        dimension_semantics=("parallel", "parallel"),
        vmem_limit_bytes=32 * 1024 * 1024,
    )

    # ---- phase 1: GAP (lane reduction, tiled + pipelined over HW) ----
    gap_sum = pl.pallas_call(
        _gap_kernel,
        out_shape=jax.ShapeDtypeStruct((B, C, 1), jnp.float32),
        grid_spec=pltpu.PrefetchScalarGridSpec(
            num_scalar_prefetch=0,
            grid=(B, n_t),
            in_specs=[pl.BlockSpec((1, C, T), lambda b, t: (b, 0, t))],
            out_specs=pl.BlockSpec((1, C, 1), lambda b, t: (b, 0, 0)),
        ),
        compiler_params=cparams_red,
    )(x)

    gap = gap_sum[:, :, 0] * (1.0 / HW)                               # (B, C) f32

    # ---- tiny per-batch gate: fc -> SiLU -> fc (same weights) -> softmax (plain JAX) ----
    w_fc32 = w_fc.astype(jnp.float32)
    b_fc32 = b_fc.astype(jnp.float32)
    y = gap @ w_fc32.T + b_fc32
    y = y * jax.nn.sigmoid(y)
    y = y @ w_fc32.T + b_fc32
    gate = jax.nn.softmax(y, axis=-1)                                 # (B, C) f32

    # Fold the channel gate into the out-conv weight (exact algebra):
    #   out[b,o,:] = sum_c w[o,c] * gate[b,c] * x[b,c,:] = (w * gate_b) @ x_b
    w_gated = (w_out.astype(jnp.float32) * gate[:, None, :]).astype(x.dtype)   # (B, C, C)
    b_out_k = b_out.astype(jnp.float32).reshape(C, 1)

    # ---- phase 2: gated out-conv, tiled & pipelined over (B, HW) ----
    out = pl.pallas_call(
        _gated_conv_kernel,
        out_shape=jax.ShapeDtypeStruct((B, C, HW), x.dtype),
        grid_spec=pltpu.PrefetchScalarGridSpec(
            num_scalar_prefetch=0,
            grid=(B, n_t),
            in_specs=[
                pl.BlockSpec((1, C, C), lambda b, t: (b, 0, 0)),      # per-batch gated weight
                pl.BlockSpec((C, 1), lambda b, t: (0, 0)),            # out conv bias
                pl.BlockSpec((1, C, T), lambda b, t: (b, 0, t)),      # x tile
            ],
            out_specs=pl.BlockSpec((1, C, T), lambda b, t: (b, 0, t)),
        ),
        compiler_params=cparams_par,
    )(w_gated, b_out_k, x)

    return out.reshape(B, C, H, W)


# ----------------------------------- reference -----------------------------------------

def distiller_ref(x_nchw, w_fc, b_fc, w_out, b_out):
    """Pure-JAX reference matching the PyTorch forward exactly (NCHW)."""
    gap = jnp.mean(x_nchw, axis=(2, 3))                               # (B, C)
    y = gap @ w_fc.T + b_fc
    y = y * jax.nn.sigmoid(y)
    y = y @ w_fc.T + b_fc
    y = jax.nn.softmax(y, axis=1)                                     # (B, C)
    z = x_nchw * y[:, :, None, None]
    out = jnp.einsum("bchw,oc->bohw", z, w_out) + b_out[None, :, None, None]
    return out


if __name__ == "__main__":
    B, C, H, W = 2, 4, 16, 16
    key = jax.random.PRNGKey(0)
    kx, k1, k2, k3, k4 = jax.random.split(key, 5)

    x = jax.random.normal(kx, (B, C, H, W), dtype=jnp.float32)
    # 1x1 conv weights are (C, C, 1, 1) in PyTorch -> squeezed to (C, C)
    w_fc = jax.random.normal(k1, (C, C), dtype=jnp.float32) * 0.3
    b_fc = jax.random.normal(k2, (C,), dtype=jnp.float32) * 0.1
    w_out = jax.random.normal(k3, (C, C), dtype=jnp.float32) * 0.3
    b_out = jax.random.normal(k4, (C,), dtype=jnp.float32) * 0.1

    out = distiller_pallas(x, w_fc, b_fc, w_out, b_out)
    out = jax.block_until_ready(out)

    ref = distiller_ref(x, w_fc, b_fc, w_out, b_out)
    np.testing.assert_allclose(np.asarray(out), np.asarray(ref), rtol=1e-5, atol=1e-5)

    print("KERNEL_OK")
</pallas_src>

<mosaic_0001>
module attributes {stable_mosaic.version = 11 : i64} {
  func.func @_gap_kernel(%arg0: i32, %arg1: i32, %arg2: memref<1x4x256xf32, #tpu.memory_space<vmem>>, %arg3: memref<1x4x1xf32, #tpu.memory_space<vmem>>) attributes {dimension_semantics = [#tpu.dimension_semantics<parallel>, #tpu.dimension_semantics<arbitrary>], iteration_bounds = array<i64: 2, 1>, scalar_prefetch = 0 : i64, scratch_operands = 0 : i64, tpu.core_type = #tpu.core_type<tc>, window_params = [{transform_indices = @transform_0, window_bounds = array<i64: 1, 4, 256>}, {transform_indices = @transform_1, window_bounds = array<i64: 1, 4, 1>}]} {
    %c0_i32 = arith.constant 0 : i32
    %0 = arith.cmpi eq, %arg1, %c0_i32 : i32
    %1 = arith.extui %0 : i1 to i32
    %c0_i32_0 = arith.constant 0 : i32
    %2 = arith.cmpi ne, %1, %c0_i32_0 : i32
    scf.if %2 {
      %cst_9 = arith.constant 0.000000e+00 : f32
      %11 = vector.broadcast %cst_9 : f32 to vector<1x4x1xf32>
      %c0_10 = arith.constant 0 : index
      %c0_11 = arith.constant 0 : index
      %c0_12 = arith.constant 0 : index
      %12 = vector.load %arg3[%c0_10, %c0_11, %c0_12] : memref<1x4x1xf32, #tpu.memory_space<vmem>>, vector<1x4x1xf32>
      tpu.vector_store %arg3[%c0_10, %c0_11, %c0_12], %11 {strides = array<i32>} : memref<1x4x1xf32, #tpu.memory_space<vmem>>, vector<1x4x1xf32>,
    } else {
    }
    %c0 = arith.constant 0 : index
    %c0_1 = arith.constant 0 : index
    %c0_2 = arith.constant 0 : index
    %3 = vector.load %arg2[%c0, %c0_1, %c0_2] : memref<1x4x256xf32, #tpu.memory_space<vmem>>, vector<1x4x256xf32>
    %4 = vector.shape_cast %3 : vector<1x4x256xf32> to vector<4x256xf32>
    %cst = arith.constant dense<0.000000e+00> : vector<4xf32>
    %5 = vector.multi_reduction <add>, %4, %cst [1] : vector<4x256xf32> to vector<4xf32>
    %6 = vector.shape_cast %5 : vector<4xf32> to vector<4x1xf32>
    %c0_3 = arith.constant 0 : index
    %c0_4 = arith.constant 0 : index
    %c0_5 = arith.constant 0 : index
    %7 = vector.load %arg3[%c0_3, %c0_4, %c0_5] : memref<1x4x1xf32, #tpu.memory_space<vmem>>, vector<1x4x1xf32>
    %8 = vector.shape_cast %6 : vector<4x1xf32> to vector<1x4x1xf32>
    %9 = arith.addf %7, %8 : vector<1x4x1xf32>
    %c0_6 = arith.constant 0 : index
    %c0_7 = arith.constant 0 : index
    %c0_8 = arith.constant 0 : index
    %10 = vector.load %arg3[%c0_6, %c0_7, %c0_8] : memref<1x4x1xf32, #tpu.memory_space<vmem>>, vector<1x4x1xf32>
    tpu.vector_store %arg3[%c0_6, %c0_7, %c0_8], %9 {strides = array<i32>} : memref<1x4x1xf32, #tpu.memory_space<vmem>>, vector<1x4x1xf32>,
    return
  }
  func.func @transform_0(%arg0: i32, %arg1: i32) -> (i32, i32, i32) {
    %c0_i32 = arith.constant 0 : i32
    %c0_i32_0 = arith.constant 0 : i32
    return %arg0, %c0_i32, %arg1 : i32, i32, i32
  }
  func.func @transform_1(%arg0: i32, %arg1: i32) -> (i32, i32, i32) {
    %c0_i32 = arith.constant 0 : i32
    %c0_i32_0 = arith.constant 0 : i32
    %c0_i32_1 = arith.constant 0 : i32
    return %arg0, %c0_i32, %c0_i32_0 : i32, i32, i32
  }
}

module attributes {stable_mosaic.version = 11 : i64} {
  func.func @_gated_conv_kernel(%arg0: i32, %arg1: i32, %arg2: memref<1x4x4xf32, #tpu.memory_space<vmem>>, %arg3: memref<4x1xf32, #tpu.memory_space<vmem>>, %arg4: memref<1x4x256xf32, #tpu.memory_space<vmem>>, %arg5: memref<1x4x256xf32, #tpu.memory_space<vmem>>) attributes {dimension_semantics = [#tpu.dimension_semantics<parallel>, #tpu.dimension_semantics<parallel>], iteration_bounds = array<i64: 2, 1>, scalar_prefetch = 0 : i64, scratch_operands = 0 : i64, tpu.core_type = #tpu.core_type<tc>, window_params = [{transform_indices = @transform_0, window_bounds = array<i64: 1, 4, 4>}, {pipeline_mode = #tpu.pipeline_mode<synchronous>, transform_indices = @transform_1, window_bounds = array<i64: 4, 1>}, {transform_indices = @transform_2, window_bounds = array<i64: 1, 4, 256>}, {transform_indices = @transform_3, window_bounds = array<i64: 1, 4, 256>}]} {
    %c0 = arith.constant 0 : index
    %c0_0 = arith.constant 0 : index
    %c0_1 = arith.constant 0 : index
    %0 = vector.load %arg4[%c0, %c0_0, %c0_1] : memref<1x4x256xf32, #tpu.memory_space<vmem>>, vector<1x4x256xf32>
    %1 = vector.shape_cast %0 : vector<1x4x256xf32> to vector<4x256xf32>
    %c0_2 = arith.constant 0 : index
    %c0_3 = arith.constant 0 : index
    %c0_4 = arith.constant 0 : index
    %2 = vector.load %arg2[%c0_2, %c0_3, %c0_4] : memref<1x4x4xf32, #tpu.memory_space<vmem>>, vector<1x4x4xf32>
    %3 = vector.shape_cast %2 : vector<1x4x4xf32> to vector<4x4xf32>
    %cst = arith.constant dense<0.000000e+00> : vector<4x256xf32>
    %4 = tpu.matmul %3, %1, %cst {dimension_numbers = #tpu.dot_dimension_numbers<[1], [0], [0], [1], [0, 0, 1, 1], [], []>} : vector<4x4xf32>, vector<4x256xf32>, vector<4x256xf32> -> vector<4x256xf32>
    %c0_5 = arith.constant 0 : index
    %c0_6 = arith.constant 0 : index
    %5 = vector.load %arg3[%c0_5, %c0_6] : memref<4x1xf32, #tpu.memory_space<vmem>>, vector<4x1xf32>
    %6 = vector.broadcast %5 : vector<4x1xf32> to vector<4x256xf32>
    %7 = arith.addf %4, %6 : vector<4x256xf32>
    %c0_7 = arith.constant 0 : index
    %c0_8 = arith.constant 0 : index
    %c0_9 = arith.constant 0 : index
    %8 = vector.load %arg5[%c0_7, %c0_8, %c0_9] : memref<1x4x256xf32, #tpu.memory_space<vmem>>, vector<1x4x256xf32>
    %9 = vector.shape_cast %8 : vector<1x4x256xf32> to vector<4x256xf32>
    %10 = vector.shape_cast %7 : vector<4x256xf32> to vector<1x4x256xf32>
    tpu.vector_store %arg5[%c0_7, %c0_8, %c0_9], %10 {strides = array<i32>} : memref<1x4x256xf32, #tpu.memory_space<vmem>>, vector<1x4x256xf32>,
    return
  }
  func.func @transform_0(%arg0: i32, %arg1: i32) -> (i32, i32, i32) {
    %c0_i32 = arith.constant 0 : i32
    %c0_i32_0 = arith.constant 0 : i32
    %c0_i32_1 = arith.constant 0 : i32
    return %arg0, %c0_i32, %c0_i32_0 : i32, i32, i32
  }
  func.func @transform_1(%arg0: i32, %arg1: i32) -> (i32, i32) {
    %c0_i32 = arith.constant 0 : i32
    %c0_i32_0 = arith.constant 0 : i32
    %c0_i32_1 = arith.constant 0 : i32
    return %c0_i32, %c0_i32_0 : i32, i32
  }
  func.func @transform_2(%arg0: i32, %arg1: i32) -> (i32, i32, i32) {
    %c0_i32 = arith.constant 0 : i32
    %c0_i32_0 = arith.constant 0 : i32
    return %arg0, %c0_i32, %arg1 : i32, i32, i32
  }
  func.func @transform_3(%arg0: i32, %arg1: i32) -> (i32, i32, i32) {
    %c0_i32 = arith.constant 0 : i32
    %c0_i32_0 = arith.constant 0 : i32
    return %arg0, %c0_i32, %arg1 : i32, i32, i32
  }
}

</mosaic_0001>

<bundles_post_ra>
// kernel: distiller_pallas.2
= control target key start
LH: loop header
LB: loop body
LE: loop exit
PB: predicated region body
PF: predicated region fallthrough
CT: control target
= control target key end

     0   :  { %s304_s6 = smov 0   ;;  %s306_s7 = smov 0   ;;  %s336_s0 = inlined_call_operand.vmem [shape: f32[2,4,256], index: 0, kind: input, shape index: {}]   ;;  %s337_s1 = inlined_call_operand.vmem [shape: f32[2,4,1], index: 1, kind: output, shape index: {}]  }
   0x1   :  { %s308_s8 = smov 0  }
   0x2 LB: > { %s23_s9 = sadd.s32 1, %s287_s7  ;;  %p237_p0 = scmp.ge.s32.totalorder %s291_s8, 1  ;;  %s291_s8 = sphi %s308_s8, %s11_s8   ;;  %s287_s7 = sphi %s306_s7, %s339_s7   ;;  %s283_s6 = sphi %s304_s6, %s338_s6  }
   0x3   : > { %p25_p1 = scmp.ge.s32.totalorder %s23_s9, 2  ;;  %p106_p2 = scmp.lt.s32.totalorder %s291_s8, 3 }
   0x5   : > { %s341_s9 = smov (%p25_p1, %s23_s9), 0  ;;  %p107_p3 = pnand %p237_p0, %p106_p2 }
   0x6   : > { %p130_p4 = scmp.lt.s32.totalorder (!%p107_p3), %s283_s6, 1 }
   0x7   : > { %110 = sbr.rel (%p107_p3) target bundleno = 146 (0x92), region = 24 }
   0xc   : > { %s343_s6 = smov (!%p130_p4, %s283_s6), 1  ;;  %vm147_vm0 = vcmask 3072   ;;  %v293_v1 = vmov 0.0   ;;  %vm156_vm1 = vcmask 1043456  }
   0xd   : > { %s243_s10 = sshll.u32 %s343_s6, 3  ;;  %s240_s11 = sshll.u32 %s343_s6, 2 }
   0xe   : > { %s137_s14 = scalar_lea.vmem %s336_s0, %s243_s10  ;;  %s142_s17 = scalar_lea.vmem %s337_s1, %s240_s11 }
   0xf   : > { %v149_v0 = vld [vmem:[%s137_s14] sm:$0xff]  ;;  %148 = vst.msk [vmem:[%s142_s17] sm:$0xf] %vm147_vm0, %v293_v1 }
  0x10   : > { %151 = vst [vmem:[#allocation1] ss:$2 sm:$0xff] %v149_v0 }
  0x16   : > { %v162_v7 = vld [vmem:[%s142_s17] sm:$0xf] }
  0x17   : > { %v152_v2 = vld.sshfl [vmem:[#allocation1] sm:$0xff pattern:$0x75316420]  ;;  %v153_v3 = vld.sshfl [vmem:[#allocation1 + $0x8] sm:$0xff pattern:$0x75316420] }
  0x18   : > { %v157_v4 = vsel %vm156_vm1, %v152_v2, 0.0  ;;  %v158_v5 = vsel %vm156_vm1, %v153_v3, 0.0 }
  0x19   : > { %v159_v6 = vadd.f32 %v158_v5, %v157_v4 }
  0x1b   : > { %160 = vadd.xlane.f32.xlu0 %v159_v6 }
  0x8e   : > { %v161_v8 = vpop.xlane.xlu0 %160 }
  0x8f   : > { %v163_v9 = vadd.f32 %v162_v7, %v161_v8 }
  0x91   : > { %165 = vst.msk [vmem:[%s142_s17] sm:$0xf] %vm147_vm0, %v163_v9 }
  0x92 PF: > { %s11_s8 = sadd.s32 1, %s291_s8   ;;  %s338_s6 = smov %s287_s7 }
  0x93   : > { %p8_p5 = scmp.ge.s32.totalorder %s11_s8, 4   ;;  %s339_s7 = smov %s341_s9 }
  0x95   :  { %10 = sbr.rel (!%p8_p5) target bundleno = 2 (0x2), region = 58 }

// kernel: distiller_pallas.3
= control target key start
LH: loop header
LB: loop body
LE: loop exit
PB: predicated region body
PF: predicated region fallthrough
CT: control target
= control target key end

     0   :  { %s482_s12 = smov 0   ;;  %s484_s13 = smov 0   ;;  %s524_s0 = inlined_call_operand.vmem [shape: f32[2,4,4], index: 0, kind: input, shape index: {}]   ;;  %s525_s1 = inlined_call_operand.vmem [shape: f32[4,1], index: 1, kind: input, shape index: {}]   ;;  %s526_s2 = inlined_call_operand.vmem [shape: f32[2,4,256], index: 2, kind: input, shape index: {}]   ;;  %s527_s3 = inlined_call_operand.vmem [shape: f32[2,4,256], index: 3, kind: output, shape index: {}]  }
   0x1   :  { %s486_s14 = smov 0  }
   0x2 LB: > { %s25_s15 = sadd.s32 1, %s455_s13  ;;  %p397_p0 = scmp.ge.s32.totalorder %s459_s14, 1  ;;  %s459_s14 = sphi %s486_s14, %s13_s14   ;;  %s455_s13 = sphi %s484_s13, %s529_s13   ;;  %s451_s12 = sphi %s482_s12, %s528_s12  }
   0x3   : > { %p27_p1 = scmp.ge.s32.totalorder %s25_s15, 2  ;;  %p167_p2 = scmp.lt.s32.totalorder %s459_s14, 3 }
   0x5   : > { %s531_s15 = smov (%p27_p1, %s25_s15), 0  ;;  %p168_p3 = pnand %p397_p0, %p167_p2 }
   0x6   : > { %p203_p4 = scmp.lt.s32.totalorder (!%p168_p3), %s451_s12, 1 }
   0x7   : > { %171 = sbr.rel (%p168_p3) target bundleno = 157 (0x9d), region = 32 }
   0xc   : > { %v229_v0 = vld [vmem:[%s525_s1] sm:$0xf]  ;;  %v461_v1 = vmov 0   ;;  %s533_s12 = smov (!%p203_p4, %s451_s12), 1  ;;  %vm243_vm0 = vcmask 1043456   ;;  %vm239_vm1 = vcmask 31744  }
   0xd   : > { %436 = vset.pattern.permute.xlu0 %v461_v1  ;;  %s409_s18 = sshll.u32 %s533_s12, 3  ;;  %s398_s22 = sshll.u32 %s533_s12, 2 }
   0xe   : > { %232 = vperm.xlu0 %436, %v229_v0   ;;  %s215_s21 = scalar_lea.vmem %s526_s2, %s409_s18  ;;  %s206_s25 = scalar_lea.vmem %s524_s0, %s398_s22 }
   0xf   : > { %v227_v2 = vld [vmem:[%s215_s21] sm:$0xff]  ;;  %s225_s28 = scalar_lea.vmem %s527_s3, %s409_s18 }
  0x10   : > { %236 = vst [vmem:[#allocation1] ss:$2 sm:$0xff] %v227_v2  ;;  %v228_v3 = vld [vmem:[%s206_s25] sm:$0xf] }
  0x17   : > { %v237_v4 = vld.sshfl [vmem:[#allocation1] sm:$0xff pattern:$0x75316420]  ;;  %v238_v5 = vld.sshfl [vmem:[#allocation1 + $0x8] sm:$0xff pattern:$0x75316420] }
  0x18   : > { %403 = vmatpush.msk.msra.mxu0 %vm243_vm0, %v237_v4  ;;  %405 = vmatpush.msk.msra.mxu1 %vm243_vm0, %v238_v5 }
  0x19   : > { %404 = vmatmul.msk.f32.vlgmr.msra.gmra.mxu0 %vm239_vm1, %v228_v3  ;;  %406 = vmatmul.msk.f32.vlgmr.msra.gmra.mxu1 %vm239_vm1, %v228_v3 }
  0x80   : > { %v233_v6 = vpop.permute.xlu0 %232 }
  0x96   : > { %v265_v7 = vpop.f32.mrf.mxu0  ;;  %v285_v8 = vpop.f32.mrf.mxu1 }
  0x97   : > { %v286_v9 = vadd.f32 %v285_v8, %v233_v6  ;;  %v266_v10 = vadd.f32 %v265_v7, %v233_v6 }
  0x99   : > { %v290_v11 = vrot.slane %v286_v9, 4 }
  0x9b   : > { %v291_v12 = vsel %vm243_vm0, %v266_v10, %v290_v11 }
  0x9c   : > { %293 = vst [vmem:[%s225_s28] sm:$0xff] %v291_v12 }
  0x9d PF: > { %s13_s14 = sadd.s32 1, %s459_s14   ;;  %s528_s12 = smov %s455_s13 }
  0x9e   : > { %p10_p5 = scmp.ge.s32.totalorder %s13_s14, 4   ;;  %s529_s13 = smov %s531_s15 }
  0xa0   :  { %12 = sbr.rel (!%p10_p5) target bundleno = 2 (0x2), region = 65 }

</bundles_post_ra>
